<compile_context>
chip_gen: v6e
topology: v6e:2x2x1
jax: 0.10.0
libtpu: 0.0.40
codegen_flags: <defaults>
</compile_context>

<pallas_src>
import jax
import jax.numpy as jnp
import numpy as np
from jax.experimental import pallas as pl
from jax.experimental.pallas import tpu as pltpu

LANE = 128
SUBLANE = 8


def _round_up(x, m):
    return ((x + m - 1) // m) * m


def _cnn_kernel(emb_ref, w_ref, cb_ref, mask_ref, wfc_ref, fcb_ref, out_ref):
    """One batch tile: im2col conv (one matmul) + bias/ReLU + masked max-pool + FC."""
    rows, _ = emb_ref.shape                 # rows = b_tile * S_pad (flattened b, t)
    s_pad, c_pad = mask_ref.shape
    bt = rows // s_pad

    # Convolution over time as ONE [rows, K] x [K, C_pad] matmul (taps live in K).
    acc = jnp.dot(emb_ref[...], w_ref[...], preferred_element_type=jnp.float32)

    # Bias (single broadcast) + ReLU; zero invalid time positions (t beyond S - fs
    # for that channel block, padded time rows, padded channels) and max-pool over
    # time.  ReLU output >= 0, so masked zeros never win the max.
    acc = jnp.maximum(acc + cb_ref[...], 0.0)                 # [rows, C_pad]
    acc = acc.reshape(bt, s_pad, c_pad) * mask_ref[...][None]  # [bt, S_pad, C_pad]
    pooled = jnp.max(acc, axis=1)                             # [bt, C_pad]

    # TODO(synk): dropout is identity here (inference / eval mode; no RNG mask).
    out = jnp.dot(pooled.astype(wfc_ref.dtype), wfc_ref[...],
                  preferred_element_type=jnp.float32) + fcb_ref[...]
    out_ref[...] = out.astype(out_ref.dtype)                  # full lane-dense store


def _pick_b_tile(B, S_pad, K, C_pad, OUT_pad, compute_bytes, requested=None,
                 vmem_budget_bytes=24 << 20):
    """Largest multiple-of-8 batch tile that fits a conservative VMEM budget (safe
    under v7x's 32 MiB scoped default / 64 MiB physical) and keeps >= 2 grid tiles
    when the batch allows it (so both v7x TensorCores get work)."""
    bt = _round_up(requested, SUBLANE) if requested else 128
    bt = max(SUBLANE, min(bt, _round_up(B, SUBLANE)))
    if B > SUBLANE:
        bt = min(bt, _round_up(-(-B // 2), SUBLANE))    # keep >= 2 parallel tiles

    # Grid-invariant operands (double-buffered by the BlockSpec pipeline).
    const_bytes = 2 * (K * C_pad * compute_bytes + C_pad * 4
                       + S_pad * C_pad * 4
                       + C_pad * OUT_pad * compute_bytes + OUT_pad * 4)

    def tile_bytes(b):
        emb = 2 * b * S_pad * K * compute_bytes          # double-buffered input tile
        inter = 3 * b * S_pad * C_pad * 4                # un-pooled f32 conv interm.
        out = 2 * b * OUT_pad * 4                        # double-buffered output tile
        return emb + inter + out

    while bt > SUBLANE and const_bytes + tile_bytes(bt) > vmem_budget_bytes:
        bt -= SUBLANE
    # TODO(synk): for very large S*C_pad, additionally chunk time inside the kernel
    # (running max in VMEM scratch) instead of only shrinking b_tile.
    return bt


def cnn_forward(text, params, filter_sizes, *, compute_dtype=jnp.bfloat16, b_tile=None):
    """text: [seq_len, batch] int32 token ids.  Returns [batch, output_dim] float32.

    compute_dtype: matmul operand dtype (bf16 default: halves DMA bytes, doubles MXU
      rate on v5e/v6e/v7x; accumulation stays f32).  Use jnp.float32 for exact parity.
    b_tile: batch rows per grid step (multiple of 8); default auto-picks the largest
      tile that fits the VMEM budget while keeping >= 2 grid tiles for the v7x cores.
    """
    filter_sizes = tuple(filter_sizes)
    emb_table = params["embedding"]                            # [V, E]
    E = emb_table.shape[1]
    n = len(filter_sizes)
    F = params[f"conv_w_{filter_sizes[0]}"].shape[-1]
    out_dim = params["fc_w"].shape[-1]
    max_fs = max(filter_sizes)
    compute_bytes = jnp.dtype(compute_dtype).itemsize

    # Embedding gather stays in XLA (table stays in HBM).  NOTE: jnp.take clamps
    # out-of-range indices; torch.nn.Embedding would raise.
    # TODO(synk): optionally fuse the gather into the kernel (scalar-prefetch ids +
    # manual DMA from an ANY-space table) to save one HBM round trip of activations.
    embedded = jnp.take(emb_table, text.T, axis=0)             # [B, S, E]
    B, S, _ = embedded.shape
    assert S >= max_fs, "sequence shorter than the largest filter size"

    K = max_fs * E                                             # im2col contraction dim
    S_pad = _round_up(S, SUBLANE)                              # tile-aligned reshape
    C = n * F
    C_pad = _round_up(C, LANE)                                 # lane-dense channels
    OUT_pad = _round_up(out_dim, LANE)                         # lane-dense output

    b_tile = _pick_b_tile(B, S_pad, K, C_pad, OUT_pad, compute_bytes, b_tile)
    B_pad = _round_up(max(B, b_tile), b_tile)
    grid = (B_pad // b_tile,)
    rows_t = b_tile * S_pad

    # ---- pack parameters once (plain JAX glue, outside the kernel) ---------------
    # All filter sizes share one [K, C_pad] conv weight: rows j*E:(j+1)*E hold tap j
    # (zero past that filter's size); channel blocks are concatenated and zero-padded.
    w_all = jnp.zeros((K, C_pad), jnp.float32)
    cb = jnp.zeros((1, C_pad), jnp.float32)
    mask_np = np.zeros((S_pad, C_pad), np.float32)
    for k, fs in enumerate(filter_sizes):
        w = params[f"conv_w_{fs}"]                             # [fs, E, F]
        w_all = w_all.at[: fs * E, k * F:(k + 1) * F].set(w.reshape(fs * E, F))
        cb = cb.at[0, k * F:(k + 1) * F].set(params[f"conv_b_{fs}"])
        mask_np[: S - fs + 1, k * F:(k + 1) * F] = 1.0         # valid conv positions
    mask = jnp.asarray(mask_np)

    wfc = jnp.zeros((C_pad, OUT_pad), jnp.float32).at[:C, :out_dim].set(params["fc_w"])
    fcb = jnp.zeros((1, OUT_pad), jnp.float32).at[0, :out_dim].set(params["fc_b"])

    # ---- im2col the taps into the K (lane) axis -----------------------------------
    # emb_taps[b, t, j*E:(j+1)*E] = embedded[b, t+j] (zeros past the sequence end;
    # those rows only feed time positions that the mask zeroes).  Built per batch row
    # in XLA, so there is no cross-batch wrapping and no in-kernel roll.
    emb_pad_t = jnp.pad(embedded, ((0, 0), (0, max_fs - 1), (0, 0)))
    emb_taps = jnp.concatenate(
        [emb_pad_t[:, j:j + S, :] for j in range(max_fs)], axis=-1)   # [B, S, K]
    emb_taps = jnp.pad(emb_taps, ((0, B_pad - B), (0, S_pad - S), (0, 0)))
    emb_flat = emb_taps.reshape(B_pad * S_pad, K).astype(compute_dtype)
    w_all = w_all.astype(compute_dtype)
    wfc = wfc.astype(compute_dtype)

    out_padded = pl.pallas_call(
        _cnn_kernel,
        out_shape=jax.ShapeDtypeStruct((B_pad, OUT_pad), jnp.float32),
        grid=grid,
        in_specs=[
            pl.BlockSpec((rows_t, K), lambda i: (i, 0)),          # im2col'ed batch tile
            pl.BlockSpec((K, C_pad), lambda i: (0, 0)),           # packed conv weight
            pl.BlockSpec((1, C_pad), lambda i: (0, 0)),           # packed conv bias
            pl.BlockSpec((S_pad, C_pad), lambda i: (0, 0)),       # time-validity mask
            pl.BlockSpec((C_pad, OUT_pad), lambda i: (0, 0)),     # padded FC weight
            pl.BlockSpec((1, OUT_pad), lambda i: (0, 0)),         # padded FC bias
        ],
        out_specs=pl.BlockSpec((b_tile, OUT_pad), lambda i: (i, 0)),
        compiler_params=pltpu.CompilerParams(
            dimension_semantics=("parallel",)),   # batch tiles shard across TCs (v7x)
    )(emb_flat, w_all, cb, mask, wfc, fcb)

    return out_padded[:B, :out_dim]


def _cnn_reference(text, params, filter_sizes):
    """Pure-JAX reference mirroring the PyTorch module's forward (eval mode)."""
    emb = jnp.take(params["embedding"], text.T, axis=0)        # [B, S, E]
    _, S, _ = emb.shape
    pooled = []
    for fs in filter_sizes:
        w = params[f"conv_w_{fs}"]                              # [fs, E, F]
        b = params[f"conv_b_{fs}"]
        conv = jnp.stack(
            [sum(emb[:, t + j, :] @ w[j] for j in range(fs)) + b
             for t in range(S - fs + 1)], axis=1)               # [B, L, F]
        pooled.append(jnp.max(jax.nn.relu(conv), axis=1))       # [B, F]
    cat = jnp.concatenate(pooled, axis=-1)                      # [B, n*F]
    return cat @ params["fc_w"] + params["fc_b"]                # [B, out]


if __name__ == "__main__":
    # Small shapes consistent with the module's forward.
    vocab_size = 50
    embedding_dim = 32
    n_filters = 4
    filter_sizes = (2, 3, 4)
    output_dim = 3
    seq_len, batch = 8, 2

    key = jax.random.PRNGKey(0)
    keys = jax.random.split(key, 3 + 2 * len(filter_sizes))

    params = {
        "embedding": 0.1 * jax.random.normal(
            keys[0], (vocab_size, embedding_dim), jnp.float32),
        "fc_w": 0.1 * jax.random.normal(
            keys[-2], (len(filter_sizes) * n_filters, output_dim), jnp.float32),
        "fc_b": 0.1 * jax.random.normal(keys[-1], (output_dim,), jnp.float32),
    }
    for i, fs in enumerate(filter_sizes):
        params[f"conv_w_{fs}"] = 0.1 * jax.random.normal(
            keys[1 + 2 * i], (fs, embedding_dim, n_filters), jnp.float32)
        params[f"conv_b_{fs}"] = 0.1 * jax.random.normal(
            keys[2 + 2 * i], (n_filters,), jnp.float32)

    text = jax.random.randint(
        jax.random.PRNGKey(42), (seq_len, batch), 0, vocab_size, dtype=jnp.int32)

    with jax.default_matmul_precision("highest"):
        ref = _cnn_reference(text, params, filter_sizes)

    # Default path: bf16 operands, f32 accumulation.
    out = cnn_forward(text, params, filter_sizes)
    jax.block_until_ready(out)
    assert out.shape == (batch, output_dim), out.shape
    err_bf16 = float(jnp.max(jnp.abs(out - ref)))
    assert err_bf16 < 5e-3, f"bf16 mismatch vs reference, max abs err = {err_bf16}"

    # f32 path: exact parity with the PyTorch reference.
    out_f32 = cnn_forward(text, params, filter_sizes, compute_dtype=jnp.float32)
    err_f32 = float(jnp.max(jnp.abs(out_f32 - ref)))
    assert err_f32 < 2e-3, f"f32 mismatch vs reference, max abs err = {err_f32}"

    # Multi-tile grid path (>= 2 batch tiles so both v7x TensorCores get work).
    batch2 = 20
    text2 = jax.random.randint(
        jax.random.PRNGKey(7), (seq_len, batch2), 0, vocab_size, dtype=jnp.int32)
    with jax.default_matmul_precision("highest"):
        ref2 = _cnn_reference(text2, params, filter_sizes)
    out2 = cnn_forward(text2, params, filter_sizes)
    jax.block_until_ready(out2)
    assert out2.shape == (batch2, output_dim), out2.shape
    err2 = float(jnp.max(jnp.abs(out2 - ref2)))
    assert err2 < 5e-3, f"multi-tile mismatch vs reference, max abs err = {err2}"

    print("KERNEL_OK")
</pallas_src>

<mosaic_0001>
module attributes {stable_mosaic.version = 11 : i64} {
  func.func @_cnn_kernel(%arg0: i32, %arg1: memref<64x128xbf16, #tpu.memory_space<vmem>>, %arg2: memref<128x128xbf16, #tpu.memory_space<vmem>>, %arg3: memref<1x128xf32, #tpu.memory_space<vmem>>, %arg4: memref<8x128xf32, #tpu.memory_space<vmem>>, %arg5: memref<128x128xbf16, #tpu.memory_space<vmem>>, %arg6: memref<1x128xf32, #tpu.memory_space<vmem>>, %arg7: memref<8x128xf32, #tpu.memory_space<vmem>>) attributes {dimension_semantics = [#tpu.dimension_semantics<parallel>], iteration_bounds = array<i64: 1>, scalar_prefetch = 0 : i64, scratch_operands = 0 : i64, tpu.core_type = #tpu.core_type<tc>, window_params = [{transform_indices = @transform_0, window_bounds = array<i64: 64, 128>}, {pipeline_mode = #tpu.pipeline_mode<synchronous>, transform_indices = @transform_1, window_bounds = array<i64: 128, 128>}, {pipeline_mode = #tpu.pipeline_mode<synchronous>, transform_indices = @transform_2, window_bounds = array<i64: 1, 128>}, {pipeline_mode = #tpu.pipeline_mode<synchronous>, transform_indices = @transform_3, window_bounds = array<i64: 8, 128>}, {pipeline_mode = #tpu.pipeline_mode<synchronous>, transform_indices = @transform_4, window_bounds = array<i64: 128, 128>}, {pipeline_mode = #tpu.pipeline_mode<synchronous>, transform_indices = @transform_5, window_bounds = array<i64: 1, 128>}, {transform_indices = @transform_6, window_bounds = array<i64: 8, 128>}]} {
    %c0 = arith.constant 0 : index
    %c0_0 = arith.constant 0 : index
    %0 = vector.load %arg1[%c0, %c0_0] : memref<64x128xbf16, #tpu.memory_space<vmem>>, vector<64x128xbf16>
    %c0_1 = arith.constant 0 : index
    %c0_2 = arith.constant 0 : index
    %1 = vector.load %arg2[%c0_1, %c0_2] : memref<128x128xbf16, #tpu.memory_space<vmem>>, vector<128x128xbf16>
    %cst = arith.constant dense<0.000000e+00> : vector<64x128xf32>
    %2 = tpu.matmul %0, %1, %cst {dimension_numbers = #tpu.dot_dimension_numbers<[1], [0], [0], [1], [0, 0, 1, 1], [], []>} : vector<64x128xbf16>, vector<128x128xbf16>, vector<64x128xf32> -> vector<64x128xf32>
    %c0_3 = arith.constant 0 : index
    %c0_4 = arith.constant 0 : index
    %3 = vector.load %arg3[%c0_3, %c0_4] : memref<1x128xf32, #tpu.memory_space<vmem>>, vector<1x128xf32>
    %4 = vector.broadcast %3 : vector<1x128xf32> to vector<64x128xf32>
    %5 = arith.addf %2, %4 : vector<64x128xf32>
    %cst_5 = arith.constant 0.000000e+00 : f32
    %6 = vector.broadcast %cst_5 : f32 to vector<64x128xf32>
    %7 = arith.maximumf %5, %6 : vector<64x128xf32>
    %8 = vector.shape_cast %7 : vector<64x128xf32> to vector<8x8x128xf32>
    %c0_6 = arith.constant 0 : index
    %c0_7 = arith.constant 0 : index
    %9 = vector.load %arg4[%c0_6, %c0_7] : memref<8x128xf32, #tpu.memory_space<vmem>>, vector<8x128xf32>
    %10 = vector.shape_cast %9 : vector<8x128xf32> to vector<1x8x128xf32>
    %11 = vector.broadcast %10 : vector<1x8x128xf32> to vector<8x8x128xf32>
    %12 = arith.mulf %8, %11 : vector<8x8x128xf32>
    %cst_8 = arith.constant dense<0xFF800000> : vector<8x128xf32>
    %13 = vector.multi_reduction <maximumf>, %12, %cst_8 [1] : vector<8x8x128xf32> to vector<8x128xf32>
    %14 = arith.truncf %13 : vector<8x128xf32> to vector<8x128xbf16>
    %c0_9 = arith.constant 0 : index
    %c0_10 = arith.constant 0 : index
    %15 = vector.load %arg5[%c0_9, %c0_10] : memref<128x128xbf16, #tpu.memory_space<vmem>>, vector<128x128xbf16>
    %cst_11 = arith.constant dense<0.000000e+00> : vector<8x128xf32>
    %16 = tpu.matmul %14, %15, %cst_11 {dimension_numbers = #tpu.dot_dimension_numbers<[1], [0], [0], [1], [0, 0, 1, 1], [], []>} : vector<8x128xbf16>, vector<128x128xbf16>, vector<8x128xf32> -> vector<8x128xf32>
    %c0_12 = arith.constant 0 : index
    %c0_13 = arith.constant 0 : index
    %17 = vector.load %arg6[%c0_12, %c0_13] : memref<1x128xf32, #tpu.memory_space<vmem>>, vector<1x128xf32>
    %18 = vector.broadcast %17 : vector<1x128xf32> to vector<8x128xf32>
    %19 = arith.addf %16, %18 : vector<8x128xf32>
    %c0_14 = arith.constant 0 : index
    %c0_15 = arith.constant 0 : index
    %20 = vector.load %arg7[%c0_14, %c0_15] : memref<8x128xf32, #tpu.memory_space<vmem>>, vector<8x128xf32>
    tpu.vector_store %arg7[%c0_14, %c0_15], %19 {strides = array<i32>} : memref<8x128xf32, #tpu.memory_space<vmem>>, vector<8x128xf32>,
    return
  }
  func.func @transform_0(%arg0: i32) -> (i32, i32) {
    %c0_i32 = arith.constant 0 : i32
    %c0_i32_0 = arith.constant 0 : i32
    return %arg0, %c0_i32 : i32, i32
  }
  func.func @transform_1(%arg0: i32) -> (i32, i32) {
    %c0_i32 = arith.constant 0 : i32
    %c0_i32_0 = arith.constant 0 : i32
    %c0_i32_1 = arith.constant 0 : i32
    return %c0_i32, %c0_i32_0 : i32, i32
  }
  func.func @transform_2(%arg0: i32) -> (i32, i32) {
    %c0_i32 = arith.constant 0 : i32
    %c0_i32_0 = arith.constant 0 : i32
    %c0_i32_1 = arith.constant 0 : i32
    return %c0_i32, %c0_i32_0 : i32, i32
  }
  func.func @transform_3(%arg0: i32) -> (i32, i32) {
    %c0_i32 = arith.constant 0 : i32
    %c0_i32_0 = arith.constant 0 : i32
    %c0_i32_1 = arith.constant 0 : i32
    return %c0_i32, %c0_i32_0 : i32, i32
  }
  func.func @transform_4(%arg0: i32) -> (i32, i32) {
    %c0_i32 = arith.constant 0 : i32
    %c0_i32_0 = arith.constant 0 : i32
    %c0_i32_1 = arith.constant 0 : i32
    return %c0_i32, %c0_i32_0 : i32, i32
  }
  func.func @transform_5(%arg0: i32) -> (i32, i32) {
    %c0_i32 = arith.constant 0 : i32
    %c0_i32_0 = arith.constant 0 : i32
    %c0_i32_1 = arith.constant 0 : i32
    return %c0_i32, %c0_i32_0 : i32, i32
  }
  func.func @transform_6(%arg0: i32) -> (i32, i32) {
    %c0_i32 = arith.constant 0 : i32
    %c0_i32_0 = arith.constant 0 : i32
    return %arg0, %c0_i32 : i32, i32
  }
}

</mosaic_0001>

<bundles_post_ra>
// kernel: tpu_custom_call.1
= control target key start
LH: loop header
LB: loop body
LE: loop exit
PB: predicated region body
PF: predicated region fallthrough
CT: control target
= control target key end

     0   :  { %11 = vsyncpa [#allocation3], 0  ;;  %s778_s0 = inlined_call_operand.hbm [shape: bf16[64,128], index: 0, kind: input, shape index: {}]   ;;  %s779_s1 = inlined_call_operand.hbm [shape: bf16[128,128], index: 1, kind: input, shape index: {}]   ;;  %s780_s2 = inlined_call_operand.vmem [shape: f32[1,128], index: 2, kind: input, shape index: {}]   ;;  %s781_s3 = inlined_call_operand.hbm [shape: f32[8,128], index: 3, kind: input, shape index: {}]   ;;  %s782_s4 = inlined_call_operand.hbm [shape: bf16[128,128], index: 4, kind: input, shape index: {}]   ;;  %s783_s5 = inlined_call_operand.vmem [shape: f32[1,128], index: 5, kind: input, shape index: {}]   ;;  %s784_s6 = inlined_call_operand.hbm [shape: f32[8,128], index: 6, kind: output, shape index: {}]  }
   0x1   :  { %12 = vsyncpa [#allocation6], 0 }
   0x2   :  { %13 = vsyncpa [#allocation9], 0 }
   0x3   :  { %14 = vsyncpa [#allocation4], 0  ;;  %s704_s21 = smov [#allocation5]   ;;  %s705_s23 = smov [#allocation2]  }
   0x4   :  { %s32_s22 = sshll.u32 %s704_s21, 4  ;;  %s20_s24 = sshll.u32 %s705_s23, 4  ;;  %s33_s22 = int_to_ptr.vmem [resolvable:$true] %s32_s22  ;;  %s21_s24 = int_to_ptr.vmem [resolvable:$true] %s20_s24 }
   0x5   :  { %s604_s25 = scalar_lea.vmem %s33_s22, 1024  ;;  %p609_p1 = scmp.lt.s32.totalorder %s33_s22, %s33_s22 }
   0x6   :  { %p605_p0 = scmp.ne.s32.totalorder %s33_s22, %s604_s25  ;;  %p610_p2 = scmp.lt.s32.totalorder %s604_s25, %s604_s25 }
   0x8   :  { %p611_p3 = por %p610_p2, %p609_p1 }
   0xa   :  { %p612_p4 = pnand %p611_p3, %p605_p0 }
   0xc   :  { %615 = shalt.err (!%p612_p4)
}
   0xd   :  { %s706_s26 = smov 64   ;;  %s707_s27 = smov 4  }
   0xe   :  { %38 = dma.hbm_to_vmem [thread:$0]  %s779_s1, 1024, %s33_s22, [#allocation6], %s706_s26, %s706_s26, %s707_s27  }
   0xf   :  { %s624_s30 = scalar_lea.vmem %s21_s24, 512  ;;  %p629_p6 = scmp.lt.s32.totalorder %s21_s24, %s21_s24 }
  0x10   :  { %p625_p5 = scmp.ne.s32.totalorder %s21_s24, %s624_s30  ;;  %p630_p7 = scmp.lt.s32.totalorder %s624_s30, %s624_s30 }
  0x12   :  { %p631_p8 = por %p630_p7, %p629_p6 }
  0x14   :  { %p632_p9 = pnand %p631_p8, %p625_p5 }
  0x16   :  { %635 = shalt.err (!%p632_p9)
}
  0x17   :  { %26 = dma.hbm_to_vmem [thread:$0]  %s778_s0, 512, %s21_s24, [#allocation3], %s706_s26, %s706_s26, %s707_s27  }
  0x18   :  { %s708_s9 = smov [#allocation7]   ;;  %s709_s11 = smov [#allocation8]  }
  0x19   :  { %s47_s10 = sshll.u32 %s708_s9, 4  ;;  %s56_s12 = sshll.u32 %s709_s11, 4  ;;  %s48_s10 = int_to_ptr.vmem [resolvable:$true] %s47_s10  ;;  %s57_s12 = int_to_ptr.vmem [resolvable:$true] %s56_s12 }
  0x1a   :  { %s644_s1 = scalar_lea.vmem %s48_s10, 128  ;;  %p649_p11 = scmp.lt.s32.totalorder %s48_s10, %s48_s10 }
  0x1b   :  { %p645_p10 = scmp.ne.s32.totalorder %s48_s10, %s644_s1  ;;  %p650_p12 = scmp.lt.s32.totalorder %s644_s1, %s644_s1 }
  0x1d   :  { %p651_p13 = por %p650_p12, %p649_p11 }
  0x1f   :  { %p652_p0 = pnand %p651_p13, %p645_p10 }
  0x21   :  { %655 = shalt.err (!%p652_p0)
}
  0x22   :  { %50 = dma.hbm_to_vmem [thread:$0]  %s781_s3, 128, %s48_s10, [#allocation6]  }
  0x23   :  { %s664_s15 = scalar_lea.vmem %s57_s12, 1024  ;;  %p669_p2 = scmp.lt.s32.totalorder %s57_s12, %s57_s12 }
  0x24   :  { %p665_p1 = scmp.ne.s32.totalorder %s57_s12, %s664_s15  ;;  %p670_p3 = scmp.lt.s32.totalorder %s664_s15, %s664_s15 }
  0x26   :  { %p671_p4 = por %p670_p3, %p669_p2 }
  0x28   :  { %p672_p5 = pnand %p671_p4, %p665_p1 }
  0x2a   :  { %675 = shalt.err (!%p672_p5)
}
  0x2b   :  { %62 = dma.hbm_to_vmem [thread:$0]  %s782_s4, 1024, %s57_s12, [#allocation9], %s706_s26, %s706_s26, %s707_s27  }
  0x2c   :  { %696 = dma.done.wait [#allocation3], 512  }
  0x2d   :  { %697 = vsyncadd [#allocation3], 4294966784 }
  0x2e   :  { %698 = dma.done.wait [#allocation6], 1152  }
  0x2f   :  { %699 = vsyncadd [#allocation6], 4294966144 }
  0x30   :  { %700 = dma.done.wait [#allocation9], 1024  }
  0x31   :  { %701 = vsyncadd [#allocation9], 4294966272  ;;  %v576_v0 = vld [vmem:[#allocation5 + $0x38] sm:$0xff]   ;;  %v577_v1 = vld [vmem:[#allocation5 + $0x30] sm:$0xff]   ;;  %v710_v13 = vmov 0.0   ;;  %vm711_vm0 = vmmov 0  }
  0x32   :  { %523 = vmatprep.subr.bf16.mxu0 %v576_v0  ;;  %v578_v2 = vld [vmem:[#allocation5 + $0x28] sm:$0xff]   ;;  %v579_v3 = vld [vmem:[#allocation5 + $0x20] sm:$0xff]   ;;  %v580_v5 = vld [vmem:[#allocation5 + $0x18] sm:$0xff]   ;;  %547 = vmatprep.subr.bf16.mxu1 %v710_v13  ;;  %vm358_vm1 = vcmask 1041409   ;;  %vm360_vm2 = vcmask 1042434   ;;  %vm362_vm3 = vcmask 1043459  }
  0x33   :  { %524 = vmatpush3.bf16.msra.mxu0 %v576_v0  ;;  %v584_v4 = vld [vmem:[#allocation2] sm:$0xff]   ;;  %v581_v6 = vld [vmem:[#allocation5 + $0x10] sm:$0xff]   ;;  %v582_v7 = vld [vmem:[#allocation5 + $0x8] sm:$0xff]   ;;  %563 = vmatprep.mubr.msk.bf16.mxu1 %vm711_vm0, %v710_v13  ;;  %vm364_vm4 = vcmask 1044484   ;;  %vm366_vm5 = vcmask 1045509   ;;  %vm368_vm6 = vcmask 1046534  }
  0x34   :  { %525 = vmatprep.subr.bf16.mxu0 %v577_v1  ;;  %539 = vmatprep.mubr.bf16.mxu0 %v584_v4  ;;  %v583_v8 = vld [vmem:[#allocation5] sm:$0xff]   ;;  %v585_v9 = vld [vmem:[#allocation2 + $0x8] sm:$0xff]   ;;  %v586_v10 = vld [vmem:[#allocation2 + $0x10] sm:$0xff]   ;;  %vm370_vm7 = vcmask 1047559   ;;  %s712_s18 = smov [#allocation10]  }
  0x35   :  { %v587_v11 = vld [vmem:[#allocation2 + $0x18] sm:$0xff]   ;;  %v588_v12 = vld [vmem:[#allocation8 + $0x38] sm:$0xff]   ;;  %v590_v15 = vld [vmem:[#allocation8 + $0x28] sm:$0xff]   ;;  %s469_s19 = sshll.u32 %s712_s18, 4  ;;  %s470_s19 = int_to_ptr.vmem [resolvable:$true] %s469_s19 }
  0x36   :  { %548 = vmatpush3.bf16.msra.mxu1 %v588_v12  ;;  %v589_v14 = vld [vmem:[#allocation8 + $0x30] sm:$0xff]   ;;  %v591_v16 = vld [vmem:[#allocation8 + $0x20] sm:$0xff]   ;;  %v592_v17 = vld [vmem:[#allocation8 + $0x18] sm:$0xff]   ;;  %s676_s20 = scalar_lea.vmem %s470_s19, 128  ;;  %p681_p7 = scmp.lt.s32.totalorder %s470_s19, %s470_s19 }
  0x37   :  { %526 = vmatpush3.bf16.msra.mxu0 %v577_v1  ;;  %549 = vmatprep.subr.bf16.mxu1 %v710_v13  ;;  %v593_v18 = vld [vmem:[#allocation8 + $0x10] sm:$0xff]   ;;  %v594_v19 = vld [vmem:[#allocation8 + $0x8] sm:$0xff]   ;;  %v595_v20 = vld [vmem:[#allocation8] sm:$0xff]   ;;  %p677_p6 = scmp.ne.s32.totalorder %s470_s19, %s676_s20  ;;  %p682_p8 = scmp.lt.s32.totalorder %s676_s20, %s676_s20 }
  0x38   :  { %527 = vmatprep.subr.bf16.mxu0 %v578_v2  ;;  %v480_v21 = vld [vmem:[%s780_s2] ss:$0 sm:$0xff] }
  0x39   :  { %v254_v24 = vld [vmem:[#allocation7] sm:$0xff]  ;;  %p683_p9 = por %p682_p8, %p681_p7 }
  0x3a   :  { %550 = vmatpush3.bf16.msra.mxu1 %v589_v14 }
  0x3b   :  { %528 = vmatpush3.bf16.msra.mxu0 %v578_v2  ;;  %551 = vmatprep.subr.bf16.mxu1 %v710_v13  ;;  %p684_p10 = pnand %p683_p9, %p677_p6 }
  0x3c   :  { %529 = vmatprep.subr.bf16.mxu0 %v579_v3 }
  0x3e   :  { %552 = vmatpush3.bf16.msra.mxu1 %v590_v15 }
  0x3f   :  { %530 = vmatpush3.bf16.msra.mxu0 %v579_v3  ;;  %553 = vmatprep.subr.bf16.mxu1 %v710_v13 }
  0x40   :  { %531 = vmatprep.subr.bf16.mxu0 %v580_v5 }
  0x42   :  { %554 = vmatpush3.bf16.msra.mxu1 %v591_v16 }
  0x43   :  { %532 = vmatpush3.bf16.msra.mxu0 %v580_v5  ;;  %555 = vmatprep.subr.bf16.mxu1 %v710_v13 }
  0x44   :  { %533 = vmatprep.subr.bf16.mxu0 %v581_v6 }
  0x46   :  { %556 = vmatpush3.bf16.msra.mxu1 %v592_v17 }
  0x47   :  { %534 = vmatpush3.bf16.msra.mxu0 %v581_v6  ;;  %557 = vmatprep.subr.bf16.mxu1 %v710_v13 }
  0x48   :  { %535 = vmatprep.subr.bf16.mxu0 %v582_v7 }
  0x4a   :  { %558 = vmatpush3.bf16.msra.mxu1 %v593_v18 }
  0x4b   :  { %536 = vmatpush3.bf16.msra.mxu0 %v582_v7  ;;  %559 = vmatprep.subr.bf16.mxu1 %v710_v13 }
  0x4c   :  { %537 = vmatprep.subr.bf16.mxu0 %v583_v8 }
  0x4e   :  { %560 = vmatpush3.bf16.msra.mxu1 %v594_v19 }
  0x4f   :  { %538 = vmatpush3.bf16.msra.mxu0 %v583_v8  ;;  %561 = vmatprep.subr.bf16.mxu1 %v710_v13 }
  0x52   :  { %540 = vmatmul.mubr.bf16.vlgmr.msra.gmra.mxu0 %v585_v9  ;;  %562 = vmatpush3.bf16.msra.mxu1 %v595_v20 }
  0x53   :  { %543 = vmatprep.mubr.bf16.mxu0 %v586_v10 }
  0x5a   :  { %544 = vmatmul.mubr.bf16.gmra.mxu0 %v587_v11 }
 0x112   :  { %v541_v22 = vpop.f32.mrf.mxu0 }
 0x113   :  { %v224_v23 = vadd.f32 %v541_v22, %v480_v21 }
 0x114   :  { %v215_v25 = vpop.f32.mrf.mxu0 }
 0x115   :  { %v248_v26 = vmax.f32 %v224_v23, 0.0  ;;  %v216_v27 = vadd.f32 %v480_v21, %v215_v25 }
 0x116   :  { %v542_v28 = vpop.f32.mrf.mxu0 }
 0x117   :  { %v257_v29 = vmul.f32 %v254_v24, %v248_v26  ;;  %v246_v30 = vmax.f32 %v216_v27, 0.0  ;;  %v227_v31 = vadd.f32 %v542_v28, %v480_v21 }
 0x118   :  { %v218_v32 = vpop.f32.mrf.mxu0 }
 0x119   :  { %v275_v33 = vrot.slane %v257_v29, 4  ;;  %v255_v34 = vmul.f32 %v254_v24, %v246_v30  ;;  %v249_v35 = vmax.f32 %v227_v31, 0.0  ;;  %v219_v36 = vadd.f32 %v480_v21, %v218_v32 }
 0x11a   :  { %v545_v37 = vpop.f32.mrf.mxu0 }
 0x11b   :  { %v276_v38 = vmax.f32 %v257_v29, %v275_v33  ;;  %v263_v39 = vrot.slane %v255_v34, 4  ;;  %v258_v40 = vmul.f32 %v254_v24, %v249_v35  ;;  %v247_v41 = vmax.f32 %v219_v36, 0.0 }
 0x11c   :  { %v240_v42 = vadd.f32 %v545_v37, %v480_v21  ;;  %v231_v43 = vpop.f32.mrf.mxu0 }
 0x11d   :  { %v277_v44 = vrot.slane %v276_v38, 2  ;;  %v264_v45 = vmax.f32 %v255_v34, %v263_v39  ;;  %v281_v46 = vrot.slane %v258_v40, 4  ;;  %v256_v47 = vmul.f32 %v254_v24, %v247_v41 }
 0x11e   :  { %v252_v48 = vmax.f32 %v240_v42, 0.0  ;;  %v232_v49 = vadd.f32 %v480_v21, %v231_v43  ;;  %v546_v50 = vpop.f32.mrf.mxu0 }
 0x11f   :  { %v278_v51 = vmax.f32 %v276_v38, %v277_v44  ;;  %v265_v52 = vrot.slane %v264_v45, 2  ;;  %v282_v53 = vmax.f32 %v258_v40, %v281_v46  ;;  %v269_v54 = vrot.slane %v256_v47, 4 }
 0x120   :  { %v261_v55 = vmul.f32 %v254_v24, %v252_v48  ;;  %v250_v56 = vmax.f32 %v232_v49, 0.0  ;;  %v243_v57 = vadd.f32 %v546_v50, %v480_v21  ;;  %v234_v58 = vpop.f32.mrf.mxu0 }
 0x121   :  { %v266_v59 = vmax.f32 %v264_v45, %v265_v52  ;;  %v283_v60 = vrot.slane %v282_v53, 2  ;;  %v270_v61 = vmax.f32 %v256_v47, %v269_v54  ;;  %v235_v1 = vadd.f32 %v480_v21, %v234_v58 }
 0x122   :  { %v299_v62 = vrot.slane %v261_v55, 4  ;;  %v259_v63 = vmul.f32 %v254_v24, %v250_v56  ;;  %v253_v0 = vmax.f32 %v243_v57, 0.0  ;;  %v279_v2 = vrot.slane %v278_v51, 1 }
 0x123   :  { %v267_v3 = vrot.slane %v266_v59, 1  ;;  %v284_v4 = vmax.f32 %v282_v53, %v283_v60  ;;  %v271_v5 = vrot.slane %v270_v61, 2  ;;  %v251_v9 = vmax.f32 %v235_v1, 0.0 }
 0x124   :  { %v300_v6 = vmax.f32 %v261_v55, %v299_v62  ;;  %v287_v7 = vrot.slane %v259_v63, 4  ;;  %v262_v8 = vmul.f32 %v254_v24, %v253_v0  ;;  %v280_v17 = vmax.f32 %v278_v51, %v279_v2 }
 0x125   :  { %v268_v10 = vmax.f32 %v266_v59, %v267_v3  ;;  %v285_v11 = vrot.slane %v284_v4, 1  ;;  %v272_v12 = vmax.f32 %v270_v61, %v271_v5  ;;  %v260_v16 = vmul.f32 %v254_v24, %v251_v9 }
 0x126   :  { %v301_v13 = vrot.slane %v300_v6, 2  ;;  %v288_v14 = vmax.f32 %v259_v63, %v287_v7  ;;  %v305_v15 = vrot.slane %v262_v8, 4  ;;  %v313_v30 = vpack.c.bf16 %v280_v17, %v280_v17  ;;  %v493_v63 = vld [vmem:[%s783_s5] ss:$0 sm:$0xff] }
 0x127   :  { %v273_v18 = vrot.slane %v272_v12, 1  ;;  %v293_v22 = vrot.slane %v260_v16, 4  ;;  %v311_v23 = vpack.c.bf16 %v268_v10, %v268_v10  ;;  %v286_v26 = vmax.f32 %v284_v4, %v285_v11 }
 0x128   :  { %v302_v19 = vmax.f32 %v300_v6, %v301_v13  ;;  %v289_v20 = vrot.slane %v288_v14, 2  ;;  %v306_v21 = vmax.f32 %v262_v8, %v305_v15  ;;  %v352_v41 = vunpack.c.l.b16 %v313_v30 }
 0x129   :  { %v274_v25 = vmax.f32 %v272_v12, %v273_v18  ;;  %v294_v29 = vmax.f32 %v260_v16, %v293_v22  ;;  %v350_v24 = vunpack.c.l.b16 %v311_v23  ;;  %v314_v37 = vpack.c.bf16 %v286_v26, %v286_v26 }
 0x12a   :  { %v290_v27 = vmax.f32 %v288_v14, %v289_v20  ;;  %v307_v28 = vrot.slane %v306_v21, 2  ;;  %v303_v32 = vrot.slane %v302_v19, 1 }
 0x12b   :  { %v312_v31 = vpack.c.bf16 %v274_v25, %v274_v25  ;;  %v295_v35 = vrot.slane %v294_v29, 2  ;;  %v353_v48 = vunpack.c.l.b16 %v314_v37 }
 0x12c   :  { %v291_v33 = vrot.slane %v290_v27, 1  ;;  %v308_v34 = vmax.f32 %v306_v21, %v307_v28  ;;  %v304_v43 = vmax.f32 %v302_v19, %v303_v32 }
 0x12d   :  { %v351_v36 = vunpack.c.l.b16 %v312_v31  ;;  %v296_v40 = vmax.f32 %v294_v29, %v295_v35 }
 0x12e   :  { %v292_v38 = vmax.f32 %v290_v27, %v291_v33  ;;  %v309_v39 = vrot.slane %v308_v34, 1  ;;  %v317_v50 = vpack.c.bf16 %v304_v43, %v304_v43 }
 0x12f   :  { %v359_v42 = vsel %vm358_vm1, %v351_v36, %v350_v24  ;;  %v297_v46 = vrot.slane %v296_v40, 1 }
 0x130   :  { %v315_v44 = vpack.c.bf16 %v292_v38, %v292_v38  ;;  %v310_v45 = vmax.f32 %v308_v34, %v309_v39  ;;  %v361_v47 = vsel %vm360_vm2, %v352_v41, %v359_v42  ;;  %v356_v56 = vunpack.c.l.b16 %v317_v50 }
 0x131   :  { %v298_v49 = vmax.f32 %v296_v40, %v297_v46  ;;  %v363_v54 = vsel %vm362_vm3, %v353_v48, %v361_v47 }
 0x132   :  { %v354_v51 = vunpack.c.l.b16 %v315_v44  ;;  %v318_v53 = vpack.c.bf16 %v310_v45, %v310_v45 }
 0x133   :  { %v316_v52 = vpack.c.bf16 %v298_v49, %v298_v49 }
 0x134   :  { %v365_v57 = vsel %vm364_vm4, %v354_v51, %v363_v54  ;;  %v357_v58 = vunpack.c.l.b16 %v318_v53 }
 0x135   :  { %v355_v55 = vunpack.c.l.b16 %v316_v52 }
 0x137   :  { %v367_v59 = vsel %vm366_vm5, %v355_v55, %v365_v57 }
 0x138   :  { %v369_v60 = vsel %vm368_vm6, %v356_v56, %v367_v59 }
 0x139   :  { %v371_v61 = vsel %vm370_vm7, %v357_v58, %v369_v60 }
 0x13a   :  { %v372_v62 = vpack.c.b16 %v371_v61, %v371_v61 }
 0x13c   :  { %564 = vmatmul.mubr.bf16.vlgmr.msra.gmra.mxu1 %v372_v62 }
 0x1fc   :  { %v456_v0 = vpop.f32.mrf.mxu1 }
 0x1fd   :  { %v457_v1 = vadd.f32 %v493_v63, %v456_v0 }
 0x1fe   :  { %v565_v2 = vpop.f32.mrf.mxu1 }
 0x1ff   :  { %462 = vst [vmem:[#allocation10] sm:$0xff] %v457_v1 }
 0x200   :  { %v459_v3 = vpop.f32.mrf.mxu1 }
 0x201   :  { %687 = shalt.err (!%p684_p10)
}
 0x202   :  { %472 = dma.vmem_to_hbm [thread:$0]  %s470_s19, 128, %s784_s6, [#allocation4]   ;;  %v566_v4 = vpop.f32.mrf.mxu1 }
 0x203   :  { %702 = dma.done.wait [#allocation4], 128  }
 0x204   :  { %703 = vsyncadd [#allocation4], 4294967168 }
 0x205   :  { %476 = vsyncpa [#allocation3], 1 }
 0x206   :  { %477 = vsyncpa [#allocation6], 1 }
 0x207   :  { %478 = vsyncpa [#allocation9], 1 }
 0x208   :  { %479 = vsyncpa [#allocation4], 1 }

</bundles_post_ra>
